<compile_context>
chip_gen: v7x
topology: tpu7x:2x2x1
jax: 0.10.0
libtpu: 0.0.40
codegen_flags: <defaults>
</compile_context>

<pallas_src>
import jax
import jax.numpy as jnp
from jax.experimental import pallas as pl
from jax.experimental.pallas import tpu as pltpu


_VMEM_TILE_BUDGET = 32 * 1024 * 1024   # budget for pipelined tile buffers
_VMEM_LIMIT_BYTES = 48 * 1024 * 1024   # <= v7x 64 MiB physical, fine on v5e/v6e


def _compiler_params(dimension_semantics):
    # Only pass TPU compiler params when actually lowering for TPU.
    if jax.default_backend() == "tpu":
        return pltpu.CompilerParams(
            dimension_semantics=dimension_semantics,
            vmem_limit_bytes=_VMEM_LIMIT_BYTES)
    return None


def _pick_lane_tile(total, bytes_per_lane, cap):
    """Lane-dim tile: multiple of 128 (or the full dim), sized from a VMEM budget."""
    if total <= 128:
        return total
    fit = _VMEM_TILE_BUDGET // max(int(bytes_per_lane), 1)
    fit = max(128, (fit // 128) * 128)
    tile = min(total, cap, fit)
    tile = max(128, (tile // 128) * 128)
    if tile >= total and total >= 256:
        # Split so both TensorCores (v7x megacore) get work.
        tile = max(128, ((total // 2) // 128) * 128)
    return tile


# ---------------------------------------------------------------------------
# In-kernel dropout: counter-based uint32 hash, threshold raw bits.
# ---------------------------------------------------------------------------
def _dropout(y, key_u32, keep_prob):
    if keep_prob >= 1.0:
        return y
    shape = y.shape
    r = jax.lax.broadcasted_iota(jnp.int32, shape, 0).astype(jnp.uint32)
    c = jax.lax.broadcasted_iota(jnp.int32, shape, 1).astype(jnp.uint32)
    h = key_u32 ^ (r * jnp.uint32(0x9E3779B1)) ^ (c * jnp.uint32(0x85EBCA77))
    # murmur-style finalizer
    h = h ^ (h >> jnp.uint32(16))
    h = h * jnp.uint32(0x7FEB352D)
    h = h ^ (h >> jnp.uint32(15))
    h = h * jnp.uint32(0x846CA68B)
    h = h ^ (h >> jnp.uint32(16))
    threshold = jnp.uint32(int(keep_prob * 4294967296.0))
    keep = h < threshold
    return jnp.where(keep, y * jnp.float32(1.0 / keep_prob), jnp.float32(0.0))


# ---------------------------------------------------------------------------
# Conv block kernel (transposed / lane-dense form):
#   y_p = W^T (Cout,K) @ X_p^T (K, TILE_M)   for the 4 pooling parities,
#   then max over parities -> +bias -> ReLU  (hoisted after the max).
# x_ref: (4, K, TILE_M) bf16 (parity-major, K on sublanes, M on lanes)
# w_ref: (Cout, K) bf16 ; b_ref: (Cout, 1) f32 ; o_ref: (Cout, TILE_M) bf16
# ---------------------------------------------------------------------------
def _conv_relu_pool_kernel(x_ref, w_ref, b_ref, o_ref):
    w = w_ref[...]
    y0 = jnp.dot(w, x_ref[0], preferred_element_type=jnp.float32)
    y1 = jnp.dot(w, x_ref[1], preferred_element_type=jnp.float32)
    y2 = jnp.dot(w, x_ref[2], preferred_element_type=jnp.float32)
    y3 = jnp.dot(w, x_ref[3], preferred_element_type=jnp.float32)
    m = jnp.maximum(jnp.maximum(y0, y1), jnp.maximum(y2, y3))
    o_ref[...] = jnp.maximum(m + b_ref[...], 0.0).astype(o_ref.dtype)


def conv_block_pool(x_chwn, w_khkwcico, b, kernel_size, stride, padding):
    """Conv2d(+bias) -> ReLU -> max_pool2d(2).  x_chwn: (Cin, H, W, N)."""
    Cin, H, W, N = x_chwn.shape
    KH = KW = kernel_size
    Cout = w_khkwcico.shape[-1]

    x = x_chwn.astype(jnp.bfloat16)
    xp = jnp.pad(x, ((0, 0), (padding, padding), (padding, padding), (0, 0)))
    Hp, Wp = H + 2 * padding, W + 2 * padding
    Ho = (Hp - KH) // stride + 1
    Wo = (Wp - KW) // stride + 1
    Hq, Wq = Ho // 2, Wo // 2          # floor pooling, like PyTorch
    K = KH * KW * Cin
    M = Hq * Wq * N

    # Parity-major, transposed im2col built directly with stride-2 slices:
    # patches (4, K, M) with K ordered (kh, kw, cin) and M ordered (hq, wq, n).
    # No separate transpose pass over the materialized patch tensor.
    pars = []
    for ph in range(2):
        for pw in range(2):
            ks = []
            for i in range(KH):
                for j in range(KW):
                    h0 = i + stride * ph
                    w0 = j + stride * pw
                    sl = xp[:, h0:h0 + 2 * stride * (Hq - 1) + 1:2 * stride,
                            w0:w0 + 2 * stride * (Wq - 1) + 1:2 * stride, :]
                    ks.append(sl)                       # (Cin, Hq, Wq, N)
            pars.append(jnp.stack(ks, axis=0).reshape(K, M))
    patches = jnp.stack(pars, axis=0)                   # (4, K, M)

    w_t = w_khkwcico.reshape(K, Cout).T.astype(jnp.bfloat16)   # (Cout, K)
    b2d = b.reshape(Cout, 1).astype(jnp.float32)

    # Per-lane VMEM bytes: double-buffered bf16 patches + bf16 out + f32 temps.
    bytes_per_m = 16 * K + 24 * Cout + 64
    TILE_M = _pick_lane_tile(M, bytes_per_m, cap=4096)
    grid = (pl.cdiv(M, TILE_M),)

    out = pl.pallas_call(
        _conv_relu_pool_kernel,
        out_shape=jax.ShapeDtypeStruct((Cout, M), jnp.bfloat16),
        grid=grid,
        in_specs=[
            pl.BlockSpec((4, K, TILE_M), lambda i: (0, 0, i)),
            pl.BlockSpec((Cout, K), lambda i: (0, 0)),
            pl.BlockSpec((Cout, 1), lambda i: (0, 0)),
        ],
        out_specs=pl.BlockSpec((Cout, TILE_M), lambda i: (0, i)),
        compiler_params=_compiler_params(("parallel",)),
    )(patches, w_t, b2d)

    return out.reshape(Cout, Hq, Wq, N)    # still CHWN for the next layer


# ---------------------------------------------------------------------------
# Fused FC stack (transposed):  for each layer  h <- dropout(relu(W h + b)).
# One pallas_call for the whole stack; intermediates stay on-chip.
# Weights are in torch nn.Linear layout (Dout, Din); activations are (Din, N)
# so the batch axis is the lane axis.  Seed arrives as an SMEM scalar.
# ---------------------------------------------------------------------------
def _make_fc_stack_kernel(n_layers, keep_prob):
    def kernel(seed_ref, x_ref, *rest):
        o_ref = rest[-1]
        wb = rest[:-1]
        seed = seed_ref[0].astype(jnp.uint32)
        pid = pl.program_id(0).astype(jnp.uint32)
        key = seed * jnp.uint32(0x9E3779B9) ^ pid * jnp.uint32(0xC2B2AE3D)
        h = x_ref[...]                                   # (Din, TILE_N) bf16
        for li in range(n_layers):
            w = wb[2 * li][...]                          # (Dout_i, Din_i) bf16
            bvec = wb[2 * li + 1][...]                   # (Dout_i, 1) f32
            y = jnp.dot(w, h, preferred_element_type=jnp.float32) + bvec
            y = jnp.maximum(y, 0.0)
            y = _dropout(y, key ^ jnp.uint32(li + 1), keep_prob)
            h = y.astype(jnp.bfloat16) if li + 1 < n_layers else y
        o_ref[...] = h                                   # f32
    return kernel


def fc_stack(x_t, weights, biases, seed, keep_prob=0.8):
    """x_t: (Din, N); weights[i]: (Dout_i, Din_i); returns (Dout_last, N) f32."""
    Din, N = x_t.shape
    n_layers = len(weights)
    Dout = weights[-1].shape[0]
    max_w = max([Din] + [w.shape[0] for w in weights])

    bytes_per_n = 4 * Din + 8 * max_w + 64
    TILE_N = _pick_lane_tile(N, bytes_per_n, cap=2048)
    grid = (pl.cdiv(N, TILE_N),)

    kern = _make_fc_stack_kernel(n_layers, keep_prob)

    in_specs = [
        pl.BlockSpec(memory_space=pltpu.MemorySpace.SMEM),       # seed scalar
        pl.BlockSpec((Din, TILE_N), lambda i: (0, i)),           # x^T
    ]
    args = [jnp.asarray(seed, dtype=jnp.int32).reshape((1,)),
            x_t.astype(jnp.bfloat16)]
    for w, b in zip(weights, biases):
        do, di = w.shape
        in_specs.append(pl.BlockSpec((do, di), lambda i: (0, 0)))
        in_specs.append(pl.BlockSpec((do, 1), lambda i: (0, 0)))
        args.append(w.astype(jnp.bfloat16))
        args.append(b.reshape(do, 1).astype(jnp.float32))

    return pl.pallas_call(
        kern,
        out_shape=jax.ShapeDtypeStruct((Dout, N), jnp.float32),
        grid=grid,
        in_specs=in_specs,
        out_specs=pl.BlockSpec((Dout, TILE_N), lambda i: (0, i)),
        compiler_params=_compiler_params(("parallel",)),
    )(*args)


# ---------------------------------------------------------------------------
# Encoder: parameters + forward
# ---------------------------------------------------------------------------
def init_encoder_params(key, channels, kernel_sizes, fc_hidden_dims, output_dim):
    params = {"conv": [], "fc": []}
    n_conv = len(kernel_sizes) - 1
    for i in range(n_conv):
        key, k1, k2 = jax.random.split(key, 3)
        cin, cout, ks = channels[i], channels[i + 1], kernel_sizes[i]
        fan_in = cin * ks * ks
        # weight stored as (KH, KW, Cin, Cout) (== torch (Cout,Cin,KH,KW).permute(2,3,1,0))
        w = jax.random.normal(k1, (ks, ks, cin, cout), jnp.float32) / jnp.sqrt(
            jnp.float32(fan_in))
        b = jax.random.normal(k2, (cout,), jnp.float32) * 0.01
        params["conv"].append((w, b))
    dims = list(fc_hidden_dims) + [output_dim]
    for i in range(len(dims) - 1):
        key, k1, k2 = jax.random.split(key, 3)
        # weight stored in torch nn.Linear layout (Dout, Din); fc[0]'s Din rows
        # are in torch CHW flatten order, which the CHWN activation layout
        # reproduces with a pure reshape (no permutation needed).
        w = jax.random.normal(k1, (dims[i + 1], dims[i]), jnp.float32) / jnp.sqrt(
            jnp.float32(dims[i]))
        b = jax.random.normal(k2, (dims[i + 1],), jnp.float32) * 0.01
        params["fc"].append((w, b))
    return params


def encoder_forward(params, x_nchw, kernel_sizes, strides, paddings, dropout_seed=0):
    # NCHW (PyTorch) -> CHWN once: channel-first, batch-last, so the large
    # Hq*Wq*N axis is the lane axis of every conv kernel and torch.flatten(x,1)
    # becomes a pure reshape afterwards.
    x = jnp.transpose(x_nchw, (1, 2, 3, 0)).astype(jnp.float32)
    for i, (w, b) in enumerate(params["conv"]):
        x = conv_block_pool(x, w, b, kernel_sizes[i], strides[i], paddings[i])

    C, Hq, Wq, N = x.shape
    feat_t = x.reshape(C * Hq * Wq, N)          # (Din, N), Din in torch CHW order

    weights = [w for (w, _) in params["fc"]]
    biases = [b for (_, b) in params["fc"]]
    out_t = fc_stack(feat_t, weights, biases, dropout_seed, keep_prob=0.8)
    return out_t.T                               # (N, output_dim)


if __name__ == "__main__":
    # Config consistent with the module:
    # 2 conv blocks (len(kernel_sizes)-1): 4->8->16 channels, k=3, s=1, p=1,
    # each followed by max_pool2d(2): 16x16 -> 8x8 -> 4x4 => flatten = 16*4*4 = 256.
    channels = [4, 8, 16]
    kernel_sizes = [3, 3, 3]
    strides = [1, 1, 1]
    paddings = [1, 1, 1]
    fc_hidden_dims = [16 * 4 * 4, 64]
    output_dim = 32

    key = jax.random.PRNGKey(0)
    kx, kp = jax.random.split(key)
    x = jax.random.normal(kx, (2, 4, 16, 16), jnp.float32)   # NCHW like PyTorch
    params = init_encoder_params(kp, channels, kernel_sizes, fc_hidden_dims,
                                 output_dim)

    out = encoder_forward(params, x, kernel_sizes, strides, paddings,
                          dropout_seed=0)
    out = jax.block_until_ready(out)

    assert out.shape == (2, output_dim), out.shape
    assert bool(jnp.all(jnp.isfinite(out)))
    print("KERNEL_OK")
</pallas_src>

<mosaic_0001>
module attributes {stable_mosaic.version = 11 : i64} {
  func.func @_conv_relu_pool_kernel(%arg0: i32, %arg1: memref<4x36x128xbf16, #tpu.memory_space<vmem>>, %arg2: memref<8x36xbf16, #tpu.memory_space<vmem>>, %arg3: memref<8x1xf32, #tpu.memory_space<vmem>>, %arg4: memref<8x128xbf16, #tpu.memory_space<vmem>>) attributes {dimension_semantics = [#tpu.dimension_semantics<arbitrary>], iteration_bounds = array<i64: 1>, scalar_prefetch = 0 : i64, scratch_operands = 0 : i64, tpu.core_type = #tpu.core_type<tc>, window_params = [{transform_indices = @transform_0, window_bounds = array<i64: 4, 36, 128>}, {pipeline_mode = #tpu.pipeline_mode<synchronous>, transform_indices = @transform_1, window_bounds = array<i64: 8, 36>}, {pipeline_mode = #tpu.pipeline_mode<synchronous>, transform_indices = @transform_2, window_bounds = array<i64: 8, 1>}, {transform_indices = @transform_3, window_bounds = array<i64: 8, 128>}]} {
    %c0 = arith.constant 0 : index
    %c0_0 = arith.constant 0 : index
    %0 = vector.load %arg2[%c0, %c0_0] : memref<8x36xbf16, #tpu.memory_space<vmem>>, vector<8x36xbf16>
    %c0_1 = arith.constant 0 : index
    %c0_2 = arith.constant 0 : index
    %c0_3 = arith.constant 0 : index
    %1 = vector.load %arg1[%c0_1, %c0_2, %c0_3] : memref<4x36x128xbf16, #tpu.memory_space<vmem>>, vector<1x36x128xbf16>
    %2 = vector.shape_cast %1 : vector<1x36x128xbf16> to vector<36x128xbf16>
    %cst = arith.constant dense<0.000000e+00> : vector<8x128xf32>
    %3 = tpu.matmul %0, %2, %cst {dimension_numbers = #tpu.dot_dimension_numbers<[1], [0], [0], [1], [0, 0, 1, 1], [], []>} : vector<8x36xbf16>, vector<36x128xbf16>, vector<8x128xf32> -> vector<8x128xf32>
    %c1 = arith.constant 1 : index
    %c0_4 = arith.constant 0 : index
    %c0_5 = arith.constant 0 : index
    %4 = vector.load %arg1[%c1, %c0_4, %c0_5] : memref<4x36x128xbf16, #tpu.memory_space<vmem>>, vector<1x36x128xbf16>
    %5 = vector.shape_cast %4 : vector<1x36x128xbf16> to vector<36x128xbf16>
    %cst_6 = arith.constant dense<0.000000e+00> : vector<8x128xf32>
    %6 = tpu.matmul %0, %5, %cst_6 {dimension_numbers = #tpu.dot_dimension_numbers<[1], [0], [0], [1], [0, 0, 1, 1], [], []>} : vector<8x36xbf16>, vector<36x128xbf16>, vector<8x128xf32> -> vector<8x128xf32>
    %c2 = arith.constant 2 : index
    %c0_7 = arith.constant 0 : index
    %c0_8 = arith.constant 0 : index
    %7 = vector.load %arg1[%c2, %c0_7, %c0_8] : memref<4x36x128xbf16, #tpu.memory_space<vmem>>, vector<1x36x128xbf16>
    %8 = vector.shape_cast %7 : vector<1x36x128xbf16> to vector<36x128xbf16>
    %cst_9 = arith.constant dense<0.000000e+00> : vector<8x128xf32>
    %9 = tpu.matmul %0, %8, %cst_9 {dimension_numbers = #tpu.dot_dimension_numbers<[1], [0], [0], [1], [0, 0, 1, 1], [], []>} : vector<8x36xbf16>, vector<36x128xbf16>, vector<8x128xf32> -> vector<8x128xf32>
    %c3 = arith.constant 3 : index
    %c0_10 = arith.constant 0 : index
    %c0_11 = arith.constant 0 : index
    %10 = vector.load %arg1[%c3, %c0_10, %c0_11] : memref<4x36x128xbf16, #tpu.memory_space<vmem>>, vector<1x36x128xbf16>
    %11 = vector.shape_cast %10 : vector<1x36x128xbf16> to vector<36x128xbf16>
    %cst_12 = arith.constant dense<0.000000e+00> : vector<8x128xf32>
    %12 = tpu.matmul %0, %11, %cst_12 {dimension_numbers = #tpu.dot_dimension_numbers<[1], [0], [0], [1], [0, 0, 1, 1], [], []>} : vector<8x36xbf16>, vector<36x128xbf16>, vector<8x128xf32> -> vector<8x128xf32>
    %13 = arith.maximumf %3, %6 : vector<8x128xf32>
    %14 = arith.maximumf %9, %12 : vector<8x128xf32>
    %15 = arith.maximumf %13, %14 : vector<8x128xf32>
    %c0_13 = arith.constant 0 : index
    %c0_14 = arith.constant 0 : index
    %16 = vector.load %arg3[%c0_13, %c0_14] : memref<8x1xf32, #tpu.memory_space<vmem>>, vector<8x1xf32>
    %17 = vector.broadcast %16 : vector<8x1xf32> to vector<8x128xf32>
    %18 = arith.addf %15, %17 : vector<8x128xf32>
    %cst_15 = arith.constant 0.000000e+00 : f32
    %19 = vector.broadcast %cst_15 : f32 to vector<8x128xf32>
    %20 = arith.maximumf %18, %19 : vector<8x128xf32>
    %21 = arith.truncf %20 : vector<8x128xf32> to vector<8x128xbf16>
    %c0_16 = arith.constant 0 : index
    %c0_17 = arith.constant 0 : index
    %22 = vector.load %arg4[%c0_16, %c0_17] : memref<8x128xbf16, #tpu.memory_space<vmem>>, vector<8x128xbf16>
    tpu.vector_store %arg4[%c0_16, %c0_17], %21 {strides = array<i32>} : memref<8x128xbf16, #tpu.memory_space<vmem>>, vector<8x128xbf16>,
    return
  }
  func.func @transform_0(%arg0: i32) -> (i32, i32, i32) {
    %c0_i32 = arith.constant 0 : i32
    %c0_i32_0 = arith.constant 0 : i32
    %c0_i32_1 = arith.constant 0 : i32
    return %c0_i32, %c0_i32_0, %arg0 : i32, i32, i32
  }
  func.func @transform_1(%arg0: i32) -> (i32, i32) {
    %c0_i32 = arith.constant 0 : i32
    %c0_i32_0 = arith.constant 0 : i32
    %c0_i32_1 = arith.constant 0 : i32
    return %c0_i32, %c0_i32_0 : i32, i32
  }
  func.func @transform_2(%arg0: i32) -> (i32, i32) {
    %c0_i32 = arith.constant 0 : i32
    %c0_i32_0 = arith.constant 0 : i32
    %c0_i32_1 = arith.constant 0 : i32
    return %c0_i32, %c0_i32_0 : i32, i32
  }
  func.func @transform_3(%arg0: i32) -> (i32, i32) {
    %c0_i32 = arith.constant 0 : i32
    %c0_i32_0 = arith.constant 0 : i32
    return %c0_i32, %arg0 : i32, i32
  }
}

</mosaic_0001>

<bundles_post_ra>
// kernel: tpu_custom_call.1
= control target key start
LH: loop header
LB: loop body
LE: loop exit
PB: predicated region body
PF: predicated region fallthrough
CT: control target
= control target key end

     0   :  { %v432_v1 = vmov 0.0   ;;  %vm41_vm0 = vcmask 1041408   ;;  %vm433_vm1 = vmmov 0   ;;  %vm37_vm2 = vcmask 293888   ;;  %s522_s0 = inlined_call_operand.vmem [shape: bf16[4,36,128], index: 0, kind: input, shape index: {}]   ;;  %s523_s1 = inlined_call_operand.vmem [shape: bf16[8,36], index: 1, kind: input, shape index: {}]   ;;  %s524_s2 = inlined_call_operand.vmem [shape: f32[8,1], index: 2, kind: input, shape index: {}]   ;;  %s525_s3 = inlined_call_operand.hbm [shape: bf16[8,128], index: 3, kind: output, shape index: {}]  }
   0x1   :  { %v396_v0 = vld [vmem:[%s522_s0] sm:$0xff]   ;;  %351 = vmatprep.subr.bf16.mxu0 %v432_v1  ;;  %361 = vmatprep.subr.bf16.mxu1 %v432_v1  ;;  %v397_v2 = vld [vmem:[%s522_s0 + $0x14] sm:$0xff]   ;;  %v398_v3 = vld [vmem:[%s522_s0 + $0x8] sm:$0xff]  }
   0x2   :  { %352 = vmatpush3.bf16.msra.mxu0 %v396_v0  ;;  %362 = vmatpush3.bf16.msra.mxu1 %v397_v2  ;;  %v399_v4 = vld [vmem:[%s522_s0 + $0x1c] sm:$0xff]   ;;  %v400_v5 = vld [vmem:[%s522_s0 + $0x10] ss:$0 sps:$4 sm:$0x33]   ;;  %v402_v10 = vld [vmem:[%s522_s0 + $0x28] sm:$0xff]  }
   0x3   :  { %353 = vmatprep.subr.bf16.mxu0 %v432_v1  ;;  %363 = vmatprep.subr.bf16.mxu1 %v432_v1  ;;  %v401_v6 = vld [vmem:[%s522_s0 + $0x24] ss:$0 sps:$4 sm:$0x33]   ;;  %v43_v7 = vsel %vm41_vm0, %v400_v5, 0  ;;  %v16_v9 = vld [vmem:[%s523_s1] sm:$0xf] }
   0x4   :  { %357 = vmatprep.mubr.msk.bf16.mxu0 %vm433_vm1, %v432_v1  ;;  %367 = vmatprep.mubr.msk.bf16.mxu1 %vm433_vm1, %v432_v1  ;;  %v107_v8 = vsel %vm41_vm0, %v401_v6, 0  ;;  %v403_v11 = vld [vmem:[%s522_s0 + $0x3c] sm:$0xff]  }
   0x5   :  { %v280_v12 = vld [vmem:[%s524_s2] sm:$0xff] }
   0x6   :  { %354 = vmatpush3.bf16.msra.mxu0 %v398_v3  ;;  %364 = vmatpush3.bf16.msra.mxu1 %v399_v4 }
   0x7   :  { %355 = vmatprep.subr.bf16.mxu0 %v432_v1  ;;  %365 = vmatprep.subr.bf16.mxu1 %v432_v1 }
   0xa   :  { %356 = vmatpush3.bf16.msra.mxu0 %v43_v7  ;;  %366 = vmatpush3.bf16.msra.mxu1 %v107_v8 }
   0xb   :  { %371 = vmatprep.subr.bf16.mxu0 %v432_v1 }
   0xc   :  { %8 = vsyncpa [#allocation3], 0  ;;  %381 = vmatprep.subr.bf16.mxu1 %v432_v1  ;;  %v434_v13 = vmov 0   ;;  %v404_v14 = vld [vmem:[%s522_s0 + $0x30] sm:$0xff]   ;;  %v405_v15 = vld [vmem:[%s522_s0 + $0x44] sm:$0xff]  }
   0xd   :  { %395 = vset.pattern.permute.xlu0 %v434_v13  ;;  %358 = vmatmul.mubr.msk.bf16.vlgmr.msra.gmra.mrb[0].mxu0 %vm37_vm2, %v16_v9  ;;  %v406_v16 = vld [vmem:[%s522_s0 + $0x38] ss:$0 sps:$4 sm:$0x33]   ;;  %v407_v17 = vld [vmem:[%s522_s0 + $0x4c] ss:$0 sps:$4 sm:$0x33]  }
   0xe   :  { %283 = vperm.xlu0 %395, %v280_v12   ;;  %368 = vmatmul.mubr.msk.bf16.vlgmr.msra.gmra.mrb[0].mxu1 %vm37_vm2, %v16_v9  ;;  %v171_v18 = vsel %vm41_vm0, %v406_v16, 0  ;;  %v235_v19 = vsel %vm41_vm0, %v407_v17, 0  ;;  %s435_s0 = smov [#allocation2]  }
   0xf   :  { %372 = vmatpush3.bf16.msra.mxu0 %v402_v10  ;;  %382 = vmatpush3.bf16.msra.mxu1 %v403_v11  ;;  %s296_s11 = sshll.u32 %s435_s0, 4  ;;  %s297_s11 = int_to_ptr.vmem [resolvable:$true] %s296_s11 }
  0x10   :  { %373 = vmatprep.subr.bf16.mxu0 %v432_v1  ;;  %383 = vmatprep.subr.bf16.mxu1 %v432_v1  ;;  %s408_s12 = scalar_lea.vmem %s297_s11, 64  ;;  %p413_p1 = scmp.lt.s32.totalorder %s297_s11, %s297_s11 }
  0x11   :  { %377 = vmatprep.mubr.msk.bf16.mxu0 %vm433_vm1, %v432_v1  ;;  %387 = vmatprep.mubr.msk.bf16.mxu1 %vm433_vm1, %v432_v1  ;;  %p409_p0 = scmp.ne.s32.totalorder %s297_s11, %s408_s12  ;;  %p414_p2 = scmp.lt.s32.totalorder %s408_s12, %s408_s12 }
  0x13   :  { %374 = vmatpush3.bf16.msra.mxu0 %v404_v14  ;;  %384 = vmatpush3.bf16.msra.mxu1 %v405_v15  ;;  %p415_p3 = por %p414_p2, %p413_p1 }
  0x14   :  { %375 = vmatprep.subr.bf16.mxu0 %v432_v1  ;;  %385 = vmatprep.subr.bf16.mxu1 %v432_v1 }
  0x15   :  { %p416_p4 = pnand %p415_p3, %p409_p0 }
  0x17   :  { %376 = vmatpush3.bf16.msra.mxu0 %v171_v18  ;;  %386 = vmatpush3.bf16.msra.mxu1 %v235_v19 }
  0x1a   :  { %378 = vmatmul.mubr.msk.bf16.vlgmr.msra.gmra.mrb[4].mxu0 %vm37_vm2, %v16_v9  ;;  %388 = vmatmul.mubr.msk.bf16.vlgmr.msra.gmra.mrb[4].mxu1 %vm37_vm2, %v16_v9 }
  0x8d   :  { %v284_v30 = vpop.permute.xlu0 %283 }
  0xe0   :  { %v79_v20 = vpop.f32.mrb[0].mxu0 }
  0xe1   :  { %v143_v21 = vpop.f32.mrb[0].mxu1  ;;  %v359_v22 = vpop.f32.mrb[1].mxu0 }
  0xe2   :  { %v277_v23 = vmax.f32 %v79_v20, %v143_v21  ;;  %v369_v24 = vpop.f32.mrb[1].mxu1  ;;  %v82_v25 = vpop.f32.mrb[2].mxu0 }
  0xe3   :  { %v146_v26 = vpop.f32.mrb[2].mxu1  ;;  %v360_v27 = vpop.f32.mrb[3].mxu0 }
  0xe4   :  { %v370_v28 = vpop.f32.mrb[3].mxu1 }
  0xed   :  { %v207_v29 = vpop.f32.mrb[4].mxu0  ;;  %v271_v31 = vpop.f32.mrb[4].mxu1 }
  0xee   :  { %v379_v32 = vpop.f32.mrb[5].mxu0  ;;  %v278_v33 = vmax.f32 %v207_v29, %v271_v31  ;;  %v389_v34 = vpop.f32.mrb[5].mxu1 }
  0xef   :  { %v210_v35 = vpop.f32.mrb[6].mxu0  ;;  %v274_v36 = vpop.f32.mrb[6].mxu1 }
  0xf0   :  { %v380_v37 = vpop.f32.mrb[7].mxu0  ;;  %v390_v38 = vpop.f32.mrb[7].mxu1  ;;  %v279_v39 = vmax.f32 %v277_v23, %v278_v33 }
  0xf2   :  { %v286_v40 = vadd.f32 %v284_v30, %v279_v39 }
  0xf4   :  { %v287_v41 = vmax.f32 %v286_v40, 0.0 }
  0xf6   :  { %v288_v42 = vpack.c.bf16 %v287_v41, %v287_v41 }
  0xf8   :  { %289 = vst [vmem:[#allocation2] sm:$0xf] %v288_v42 }
  0xf9   :  { %419 = shalt.err (!%p416_p4)
}
  0xfa   :  { %s420_s15 = scalar_lea.hbm %s525_s3, 64 }
  0xfb   :  { %p421_p5 = scmp.ne.s32.totalorder %s525_s3, %s420_s15  ;;  %p424_p6 = scmp.lt.u32.totalorder %s420_s15, %s525_s3 }
  0xfd   :  { %p426_p7 = pnand %p424_p6, %p421_p5 }
  0xff   :  { %429 = shalt.err (!%p426_p7)
}
 0x100   :  { %299 = dma.vmem_to_hbm [thread:$0]  %s297_s11, 64, %s525_s3, [#allocation3]  }
 0x101   :  { %430 = dma.done.wait [#allocation3], 64  }
 0x102   :  { %431 = vsyncadd [#allocation3], 4294967232 }
 0x103   :  { %303 = vsyncpa [#allocation3], 1 }

</bundles_post_ra>
